<compile_context>
chip_gen: v5e
topology: v5e:2x2
jax: 0.10.0
libtpu: 0.0.40
codegen_flags: <defaults>
</compile_context>

<pallas_src>
import functools

import jax
import jax.numpy as jnp
from jax.experimental import pallas as pl
from jax.experimental.pallas import tpu as pltpu


def mlp_small_kernel(xt_ref, p1_ref, p3_ref, o_ref, *,
                     n_inputs: int, h_sz: int, n_outputs: int,
                     layer_norm: bool, eps: float = 1e-5):
    # xt_ref : [n_inputs, TM]         (batch on the lane axis)
    # p1_ref : [h_sz, n_inputs + 3]   = [ w1 | b1 | gamma | beta ]
    # p3_ref : [h_sz + 1, n_outputs]  = [ w3.T ; b3.T ]
    # o_ref  : [n_outputs, TM]
    xt = xt_ref[...]
    p1 = p1_ref[...]
    p3 = p3_ref[...]

    w1 = p1[:, :n_inputs]                      # [h_sz, n_inputs]
    b1 = p1[:, n_inputs:n_inputs + 1]          # [h_sz, 1]

    # ----- l1: h = W1 @ x + b1 -> [h_sz, TM] -----
    # Unrolled VPU multiply-adds (contraction dim = n_inputs = 4): avoids MXU
    # pad/pop overhead and is exact f32 arithmetic.
    h = w1[:, 0:1] * xt[0:1, :]
    for k in range(1, n_inputs):
        h = h + w1[:, k:k + 1] * xt[k:k + 1, :]
    h = h + b1

    # ----- optional LayerNorm over the feature (sublane) axis -----
    if layer_norm:
        gamma = p1[:, n_inputs + 1:n_inputs + 2]   # [h_sz, 1]
        beta = p1[:, n_inputs + 2:n_inputs + 3]    # [h_sz, 1]
        mu = jnp.mean(h, axis=0, keepdims=True)            # [1, TM]
        ms = jnp.mean(h * h, axis=0, keepdims=True)         # [1, TM] (one pass)
        inv = jax.lax.rsqrt(ms - mu * mu + eps)              # [1, TM]
        h = (h - mu) * (inv * gamma) + beta

    # ----- tanh (EUP) -----
    h = jnp.tanh(h)

    # ----- l3: out = W3 @ h + b3 -> [n_outputs, TM] -----
    # VPU multiply + XLU sublane-sum per output row (contraction dim = h_sz = 16).
    w3t = p3[:h_sz, :]                          # [h_sz, n_outputs]
    b3t = p3[h_sz:h_sz + 1, :]                  # [1, n_outputs]
    rows = []
    for o in range(n_outputs):
        r = jnp.sum(w3t[:, o:o + 1] * h, axis=0, keepdims=True) + b3t[:, o:o + 1]
        rows.append(r)
    out = rows[0] if n_outputs == 1 else jnp.concatenate(rows, axis=0)

    o_ref[...] = out.astype(o_ref.dtype)


def pack_params(params):
    """Pack the 6 tiny parameter tensors into two contiguous slabs ONCE.

    p1 = [h_sz, n_inputs + 3]  = [ w1 | b1 | gamma | beta ]
    p3 = [h_sz + 1, n_outputs] = [ w3.T ; b3.T ]
    Call this at init / parameter-update time, not per forward.
    """
    p1 = jnp.concatenate(
        [params["w1"], params["b1"], params["g1"], params["be1"]], axis=1)
    p3 = jnp.concatenate([params["w3"].T, params["b3"].T], axis=0)
    return p1, p3


@functools.partial(jax.jit, static_argnames=("layer_norm", "tm"))
def mlp_forward(xt, p1, p3, *, layer_norm: bool, tm: int = 2048):
    """Fused MLPSMALL forward.

    xt : [n_inputs, B] float32, feature-major (batch on the minor axis).
    p1 : [h_sz, n_inputs + 3]   packed slab from pack_params().
    p3 : [h_sz + 1, n_outputs]  packed slab from pack_params().
    Returns [B, n_outputs] float32.

    tm: batch tile (multiple of 128).  Default 2048 amortizes per-grid-step
    overhead on single-TC v5e/v6e; on v7x pick tm <= ceil(B / 2) rounded up to
    128 so grid >= 2 and both TensorCores get a tile.
    """
    n_inputs, B = xt.shape
    h_sz = p1.shape[0]
    n_outputs = p3.shape[1]

    # Effective tile: either the full batch (single full-extent block, no 128
    # divisibility needed) or a multiple of 128.
    tm_eff = min(tm, B)
    if tm_eff < B:
        tm_eff = max(128, (tm_eff // 128) * 128)
        if tm_eff >= B:
            tm_eff = B
    grid = (pl.cdiv(B, tm_eff),)

    kernel = functools.partial(
        mlp_small_kernel,
        n_inputs=n_inputs, h_sz=h_sz, n_outputs=n_outputs,
        layer_norm=layer_norm)

    flops = 2 * B * (n_inputs * h_sz + h_sz * n_outputs) + (8 * B * h_sz if layer_norm else 0)
    cost = pl.CostEstimate(
        flops=flops,
        transcendentals=B * h_sz,                                   # tanh
        bytes_accessed=4 * ((n_inputs + n_outputs) * B + p1.size + p3.size))

    out_t = pl.pallas_call(
        kernel,
        out_shape=jax.ShapeDtypeStruct((n_outputs, B), jnp.float32),
        grid_spec=pltpu.PrefetchScalarGridSpec(
            num_scalar_prefetch=0,
            grid=grid,
            in_specs=[
                # batch-tiled input (auto double-buffered across grid steps)
                pl.BlockSpec((n_inputs, tm_eff), lambda i: (0, i)),
                # parameter slabs: constant index_map -> stay resident in VMEM
                pl.BlockSpec((h_sz, n_inputs + 3), lambda i: (0, 0)),
                pl.BlockSpec((h_sz + 1, n_outputs), lambda i: (0, 0)),
            ],
            out_specs=pl.BlockSpec((n_outputs, tm_eff), lambda i: (0, i)),
        ),
        compiler_params=pltpu.CompilerParams(
            # batch tiles are independent -> shard across TCs on v7x megacore
            dimension_semantics=("parallel",),
        ),
        cost_estimate=cost,
    )(xt, p1, p3)

    if n_outputs == 1:
        # (1, B) -> (B, 1): pure metadata reshape, no layout transpose.
        return out_t.reshape(B, 1)
    return out_t.T   # general case: real transpose, only if n_outputs > 1


def init_params(key, n_inputs=4, h_sz=16, n_outputs=1):
    """Synthetic init matching nn.Linear / nn.LayerNorm shapes (PyTorch [out, in])."""
    ks = jax.random.split(key, 4)

    def linear(kw, kb, fan_in, fan_out):
        bound = 1.0 / jnp.sqrt(fan_in)
        w = jax.random.uniform(kw, (fan_out, fan_in), jnp.float32, -bound, bound)
        b = jax.random.uniform(kb, (fan_out, 1), jnp.float32, -bound, bound)
        return w, b

    w1, b1 = linear(ks[0], ks[1], n_inputs, h_sz)
    w3, b3 = linear(ks[2], ks[3], h_sz, n_outputs)

    return {
        "w1": w1, "b1": b1,
        "g1": jnp.ones((h_sz, 1), jnp.float32),
        "be1": jnp.zeros((h_sz, 1), jnp.float32),
        "w3": w3, "b3": b3,
    }


def mlp_reference(x, params, *, layer_norm: bool, eps: float = 1e-5):
    hi = jax.lax.Precision.HIGHEST
    h = jnp.dot(x, params["w1"].T, precision=hi) + params["b1"][:, 0]
    if layer_norm:
        mu = jnp.mean(h, axis=-1, keepdims=True)
        var = jnp.mean((h - mu) ** 2, axis=-1, keepdims=True)
        h = (h - mu) * jax.lax.rsqrt(var + eps) * params["g1"][:, 0] + params["be1"][:, 0]
    h = jnp.tanh(h)
    return jnp.dot(h, params["w3"].T, precision=hi) + params["b3"][:, 0]


if __name__ == "__main__":
    key = jax.random.PRNGKey(0)
    k_x, k_p = jax.random.split(key)

    n_inputs, h_sz, n_outputs = 4, 16, 1
    params = init_params(k_p, n_inputs=n_inputs, h_sz=h_sz, n_outputs=n_outputs)
    p1, p3 = pack_params(params)          # packed ONCE, outside the forward path

    ok = True
    # (B=256, tm=128): 2 batch tiles -> exercises the grid / v7x megacore path.
    # (B=200, tm=128): ragged last tile -> exercises clipped writeback.
    for B, tm in ((256, 128), (200, 128)):
        x = jax.random.normal(k_x, (B, n_inputs), jnp.float32)
        xt = jnp.asarray(x.T)             # producer-side feature-major activations
        for layer_norm in (False, True):  # module default is layer_norm=False
            out = jax.block_until_ready(
                mlp_forward(xt, p1, p3, layer_norm=layer_norm, tm=tm))
            ref = mlp_reference(x, params, layer_norm=layer_norm)
            ok &= out.shape == (B, n_outputs)
            ok &= bool(jnp.allclose(out, ref, atol=1e-4, rtol=1e-4))

    if ok:
        print("KERNEL_OK")
    else:
        raise SystemExit("mismatch vs reference")
</pallas_src>

<mosaic_0001>
module attributes {stable_mosaic.version = 11 : i64} {
  func.func @mlp_small_kernel(%arg0: i32, %arg1: memref<4x128xf32, #tpu.memory_space<vmem>>, %arg2: memref<16x7xf32, #tpu.memory_space<vmem>>, %arg3: memref<17x1xf32, #tpu.memory_space<vmem>>, %arg4: memref<1x128xf32, #tpu.memory_space<vmem>>) attributes {dimension_semantics = [#tpu.dimension_semantics<parallel>], iteration_bounds = array<i64: 2>, scalar_prefetch = 0 : i64, scratch_operands = 0 : i64, tpu.core_type = #tpu.core_type<tc>, window_params = [{transform_indices = @transform_0, window_bounds = array<i64: 4, 128>}, {pipeline_mode = #tpu.pipeline_mode<synchronous>, transform_indices = @transform_1, window_bounds = array<i64: 16, 7>}, {pipeline_mode = #tpu.pipeline_mode<synchronous>, transform_indices = @transform_2, window_bounds = array<i64: 17, 1>}, {transform_indices = @transform_3, window_bounds = array<i64: 1, 128>}]} {
    %c0 = arith.constant 0 : index
    %c0_0 = arith.constant 0 : index
    %0 = vector.load %arg1[%c0, %c0_0] : memref<4x128xf32, #tpu.memory_space<vmem>>, vector<4x128xf32>
    %c0_1 = arith.constant 0 : index
    %c0_2 = arith.constant 0 : index
    %1 = vector.load %arg2[%c0_1, %c0_2] : memref<16x7xf32, #tpu.memory_space<vmem>>, vector<16x7xf32>
    %c0_3 = arith.constant 0 : index
    %c0_4 = arith.constant 0 : index
    %2 = vector.load %arg3[%c0_3, %c0_4] : memref<17x1xf32, #tpu.memory_space<vmem>>, vector<17x1xf32>
    %3 = vector.extract_strided_slice %1 {offsets = [0, 0], sizes = [16, 4], strides = [1, 1]} : vector<16x7xf32> to vector<16x4xf32>
    %4 = vector.extract_strided_slice %1 {offsets = [0, 4], sizes = [16, 1], strides = [1, 1]} : vector<16x7xf32> to vector<16x1xf32>
    %5 = vector.extract_strided_slice %3 {offsets = [0, 0], sizes = [16, 1], strides = [1, 1]} : vector<16x4xf32> to vector<16x1xf32>
    %6 = vector.extract_strided_slice %0 {offsets = [0, 0], sizes = [1, 128], strides = [1, 1]} : vector<4x128xf32> to vector<1x128xf32>
    %7 = vector.broadcast %5 : vector<16x1xf32> to vector<16x128xf32>
    %8 = vector.broadcast %6 : vector<1x128xf32> to vector<16x128xf32>
    %9 = arith.mulf %7, %8 : vector<16x128xf32>
    %10 = vector.extract_strided_slice %3 {offsets = [0, 1], sizes = [16, 1], strides = [1, 1]} : vector<16x4xf32> to vector<16x1xf32>
    %11 = vector.extract_strided_slice %0 {offsets = [1, 0], sizes = [1, 128], strides = [1, 1]} : vector<4x128xf32> to vector<1x128xf32>
    %12 = vector.broadcast %10 : vector<16x1xf32> to vector<16x128xf32>
    %13 = vector.broadcast %11 : vector<1x128xf32> to vector<16x128xf32>
    %14 = arith.mulf %12, %13 : vector<16x128xf32>
    %15 = arith.addf %9, %14 : vector<16x128xf32>
    %16 = vector.extract_strided_slice %3 {offsets = [0, 2], sizes = [16, 1], strides = [1, 1]} : vector<16x4xf32> to vector<16x1xf32>
    %17 = vector.extract_strided_slice %0 {offsets = [2, 0], sizes = [1, 128], strides = [1, 1]} : vector<4x128xf32> to vector<1x128xf32>
    %18 = vector.broadcast %16 : vector<16x1xf32> to vector<16x128xf32>
    %19 = vector.broadcast %17 : vector<1x128xf32> to vector<16x128xf32>
    %20 = arith.mulf %18, %19 : vector<16x128xf32>
    %21 = arith.addf %15, %20 : vector<16x128xf32>
    %22 = vector.extract_strided_slice %3 {offsets = [0, 3], sizes = [16, 1], strides = [1, 1]} : vector<16x4xf32> to vector<16x1xf32>
    %23 = vector.extract_strided_slice %0 {offsets = [3, 0], sizes = [1, 128], strides = [1, 1]} : vector<4x128xf32> to vector<1x128xf32>
    %24 = vector.broadcast %22 : vector<16x1xf32> to vector<16x128xf32>
    %25 = vector.broadcast %23 : vector<1x128xf32> to vector<16x128xf32>
    %26 = arith.mulf %24, %25 : vector<16x128xf32>
    %27 = arith.addf %21, %26 : vector<16x128xf32>
    %28 = vector.broadcast %4 : vector<16x1xf32> to vector<16x128xf32>
    %29 = arith.addf %27, %28 : vector<16x128xf32>
    %30 = math.tanh %29 : vector<16x128xf32>
    %31 = vector.extract_strided_slice %2 {offsets = [0, 0], sizes = [16, 1], strides = [1, 1]} : vector<17x1xf32> to vector<16x1xf32>
    %32 = vector.extract_strided_slice %2 {offsets = [16, 0], sizes = [1, 1], strides = [1, 1]} : vector<17x1xf32> to vector<1x1xf32>
    %33 = vector.broadcast %31 : vector<16x1xf32> to vector<16x128xf32>
    %34 = arith.mulf %33, %30 : vector<16x128xf32>
    %cst = arith.constant dense<0.000000e+00> : vector<128xf32>
    %35 = vector.multi_reduction <add>, %34, %cst [0] : vector<16x128xf32> to vector<128xf32>
    %36 = vector.shape_cast %35 : vector<128xf32> to vector<1x128xf32>
    %37 = vector.broadcast %32 : vector<1x1xf32> to vector<1x128xf32>
    %38 = arith.addf %36, %37 : vector<1x128xf32>
    %c0_5 = arith.constant 0 : index
    %c0_6 = arith.constant 0 : index
    %39 = vector.load %arg4[%c0_5, %c0_6] : memref<1x128xf32, #tpu.memory_space<vmem>>, vector<1x128xf32>
    tpu.vector_store %arg4[%c0_5, %c0_6], %38 {strides = array<i32>} : memref<1x128xf32, #tpu.memory_space<vmem>>, vector<1x128xf32>,
    return
  }
  func.func @transform_0(%arg0: i32) -> (i32, i32) {
    %c0_i32 = arith.constant 0 : i32
    %c0_i32_0 = arith.constant 0 : i32
    return %c0_i32, %arg0 : i32, i32
  }
  func.func @transform_1(%arg0: i32) -> (i32, i32) {
    %c0_i32 = arith.constant 0 : i32
    %c0_i32_0 = arith.constant 0 : i32
    %c0_i32_1 = arith.constant 0 : i32
    return %c0_i32, %c0_i32_0 : i32, i32
  }
  func.func @transform_2(%arg0: i32) -> (i32, i32) {
    %c0_i32 = arith.constant 0 : i32
    %c0_i32_0 = arith.constant 0 : i32
    %c0_i32_1 = arith.constant 0 : i32
    return %c0_i32, %c0_i32_0 : i32, i32
  }
  func.func @transform_3(%arg0: i32) -> (i32, i32) {
    %c0_i32 = arith.constant 0 : i32
    %c0_i32_0 = arith.constant 0 : i32
    return %c0_i32, %arg0 : i32, i32
  }
}

</mosaic_0001>

<bundles_post_ra>
// kernel: mlp_forward.1
= control target key start
LH: loop header
LB: loop body
LE: loop exit
PB: predicated region body
PF: predicated region fallthrough
CT: control target
= control target key end

     0   :  { %8 = vsyncpa [#allocation3], 0  ;;  %s583_s0 = inlined_call_operand.vmem [shape: f32[4,256], index: 0, kind: input, shape index: {}]   ;;  %s584_s1 = inlined_call_operand.vmem [shape: f32[16,7], index: 1, kind: input, shape index: {}]   ;;  %s585_s2 = inlined_call_operand.vmem [shape: f32[17,1], index: 2, kind: input, shape index: {}]   ;;  %s586_s3 = inlined_call_operand.hbm [shape: f32[1,256], index: 3, kind: output, shape index: {}]  }
   0x1   :  { %10 = vsyncpa [#allocation3 + $0x1], 0  ;;  %s483_s12 = smov 0   ;;  %s485_s13 = smov 0  }
   0x2   :  { %s487_s14 = smov 0   ;;  %s489_s15 = smov 0  }
   0x3 LB: > { %s504_s16 = sadd.s32 4294967295, %s456_s15   ;;  %s329_s17 = sadd.s32 4294967294, %s456_s15   ;;  %s456_s15 = sphi %s489_s15, %s592_s15   ;;  %s452_s14 = sphi %s487_s14, %s591_s14   ;;  %s448_s13 = sphi %s485_s13, %s590_s13   ;;  %s444_s12 = sphi %s483_s12, %s589_s12  }
   0x4   : > { %s508_s18 = sadd.s32 1, %s456_s15   ;;  %s91_s19 = sadd.s32 1, %s452_s14 }
   0x5   : > { %s88_s20 = ssub.s32 %s456_s15, %s508_s18  ;;  %p101_p0 = scmp.ne.s32.totalorder %s452_s14, %s448_s13 }
   0x6   : > { %p89_p1 = scmp.eq.s32.totalorder %s88_s20, 0  ;;  %p102_p2 = scmp.eq.s32.totalorder %s504_s16, 1 }
   0x7   : > { %p107_p3 = scmp.ne.s32.totalorder %s448_s13, %s444_s12  ;;  %p108_p4 = scmp.eq.s32.totalorder %s329_s17, 1 }
   0x8   : > { %s519_s21 = scalar_select %p89_p1, %s452_s14, %s91_s19  }
   0x9   : > { %p521_p5 = por %p102_p2, %p101_p0  ;;  %p525_p6 = por %p108_p4, %p107_p3 }
   0xa   : > { %p332_p7 = scmp.ge.s32.totalorder %s456_s15, 1  ;;  %p139_p8 = scmp.lt.s32.totalorder %s456_s15, 3 }
   0xc   : > { %p140_p9 = pnand %p332_p7, %p139_p8 }
   0xd   : > { %p161_p10 = scmp.lt.s32.totalorder (!%p140_p9), %s504_s16, 1  ;;  %s159_s17 = sand.u32 (!%p140_p9), 1, %s448_s13  }
   0xe   : > { %143 = sbr.rel (%p140_p9) target bundleno = 192 (0xc0), region = 32  ;;  %s270_s24 = scalar_lea.hbm (!%p140_p9), %s586_s3, %s504_s16 }
   0xf   : > { %s160_s25 = scalar_lea.vmem (!%p140_p9), [#allocation2], %s159_s17  ;;  %s274_s27 = sshll.u32 (!%p140_p9), %s270_s24, 4  ;;  %s275_s27 = int_to_ptr.hbm [resolvable:$true] %s274_s27 }
  0x10   : > { %s272_s26 = sshll.u32 (!%p140_p9), %s160_s25, 4  ;;  %s262_s28 = scalar_lea.sflag (!%p140_p9), [#allocation3], %s159_s17  ;;  %s273_s26 = int_to_ptr.vmem [resolvable:$true] %s272_s26 }
  0x11   : > { %s408_s29 = sshra.s32 (!%p140_p9), %s275_s27, 4  ;;  %s414_s5 = scalar_lea.hbm (!%p140_p9), %s586_s3, 2  ;;  %s409_s29 = int_to_ptr.hbm [resolvable:$true] %s408_s29 }
  0x12   : > { %s410_s30 = scalar_lea.hbm (!%p140_p9), %s409_s29, 1  ;;  %p415_p0 = scmp.lt.s32.totalorder (!%p140_p9), %s409_s29, %s586_s3 }
  0x13   : > { %v166_v0 = vld [vmem:[%s584_s1] sm:$0xff]  ;;  %v458_v1 = vmov 1   ;;  %v459_v2 = vmov 0   ;;  %v460_v3 = vmov 2   ;;  %v167_v4 = vld [vmem:[%s584_s1 + $0x8] sm:$0xff]  ;;  %v461_v5 = vmov 3   ;;  %p411_p11 = scmp.ne.s32.totalorder %s409_s29, %s410_s30  ;;  %p416_p1 = scmp.lt.s32.totalorder %s414_s5, %s410_s30 }
  0x14   : > { %381 = vset.pattern.permute.xlu1 %v458_v1  ;;  %380 = vset.pattern.permute.xlu0 %v459_v2  ;;  %v462_v6 = vmov 4   ;;  %v169_v7 = vld [vmem:[%s585_s2 + $0x8] sm:$0xff]  ;;  %v168_v8 = vld [vmem:[%s585_s2] sm:$0xff]  ;;  %v170_v9 = vld [vmem:[%s585_s2 + $0x10] sm:$0x1]  ;;  %s162_s7 = scalar_select %p161_p10, %s504_s16, 1 }
  0x15   : > { %185 = vperm.xlu1 %381, %v166_v0   ;;  %173 = vperm.xlu0 %380, %v166_v0   ;;  %p412_p12 = pnand %p411_p11, %p521_p5  ;;  %p417_p2 = por %p416_p1, %p415_p0 }
  0x16   : > { %382 = vset.pattern.permute.xlu2 %v460_v3  ;;  %s333_s8 = sshll.u32 %s162_s7, 2 }
  0x17   : > { %198 = vperm.xlu2 %382, %v166_v0   ;;  %s164_s11 = scalar_lea.vmem %s583_s0, %s333_s8  ;;  %p413_p13 = pneg %p412_p12 }
  0x18   : > { %v165_v13 = vld [vmem:[%s164_s11] sm:$0xf] }
  0x19   : > { %v192_v14 = vperm.slane %v165_v13, 1  ;;  %v181_v15 = vperm.slane %v165_v13, 0  ;;  %v205_v20 = vperm.slane %v165_v13, 2  ;;  %v218_v24 = vperm.slane %v165_v13, 3  ;;  %p418_p3 = pnand %p417_p2, %p413_p13 }
  0x1d   : > { %189 = vperm.xlu1 %381, %v167_v4   ;;  %178 = vperm.xlu0 %380, %v167_v4  }
  0x1f   : > { %202 = vperm.xlu2 %382, %v167_v4  }
  0x25   : > { %384 = vset.pattern.permute.xlu1 %v461_v5  ;;  %383 = vset.pattern.permute.xlu0 %v461_v5 }
  0x26   : > { %215 = vperm.xlu1 %384, %v167_v4   ;;  %211 = vperm.xlu0 %383, %v166_v0  }
  0x27   : > { %385 = vset.pattern.permute.xlu2 %v462_v6 }
  0x28   : > { %224 = vperm.xlu2 %385, %v166_v0  }
  0x2e   : > { %386 = vset.pattern.permute.xlu1 %v462_v6  ;;  %388 = vset.pattern.permute.xlu0 %v459_v2 }
  0x2f   : > { %228 = vperm.xlu1 %386, %v167_v4   ;;  %242 = vperm.xlu0 %388, %v169_v7  }
  0x30   : > { %387 = vset.pattern.permute.xlu2 %v459_v2 }
  0x31   : > { %237 = vperm.xlu2 %387, %v168_v8  }
  0x37   : > { %389 = vset.pattern.permute.xlu1 %v459_v2 }
  0x38   : > { %256 = vperm.xlu1 %389, %v170_v9  }
  0x71   : > { %v199_v12 = vpop.permute.xlu2 %198 }
  0x72   : > { %v206_v23 = vmul.f32 %v205_v20, %v199_v12 }
  0x79   : > { %v203_v21 = vpop.permute.xlu2 %202 }
  0x7a   : > { %v207_v32 = vmul.f32 %v205_v20, %v203_v21 }
  0x82   : > { %v225_v33 = vpop.permute.xlu2 %224 }
  0x87   : > { %v186_v10 = vpop.permute.xlu1 %185  ;;  %v174_v11 = vpop.permute.xlu0 %173 }
  0x88   : > { %v193_v18 = vmul.f32 %v192_v14, %v186_v10  ;;  %v182_v19 = vmul.f32 %v181_v15, %v174_v11 }
  0x8a   : > { %v195_v22 = vadd.f32 %v193_v18, %v182_v19 }
  0x8b   : > { %v238_v42 = vpop.permute.xlu2 %237 }
  0x8c   : > { %v208_v29 = vadd.f32 %v206_v23, %v195_v22 }
  0x8f   : > { %v190_v16 = vpop.permute.xlu1 %189  ;;  %v179_v17 = vpop.permute.xlu0 %178 }
  0x90   : > { %v194_v25 = vmul.f32 %v192_v14, %v190_v16  ;;  %v183_v26 = vmul.f32 %v181_v15, %v179_v17 }
  0x92   : > { %v196_v31 = vadd.f32 %v194_v25, %v183_v26 }
  0x94   : > { %v209_v36 = vadd.f32 %v207_v32, %v196_v31 }
  0x98   : > { %v216_v27 = vpop.permute.xlu1 %215  ;;  %v212_v28 = vpop.permute.xlu0 %211 }
  0x99   : > { %v219_v30 = vmul.f32 %v218_v24, %v212_v28  ;;  %v220_v35 = vmul.f32 %v218_v24, %v216_v27 }
  0x9b   : > { %v221_v34 = vadd.f32 %v219_v30, %v208_v29  ;;  %v222_v38 = vadd.f32 %v220_v35, %v209_v36 }
  0x9d   : > { %v231_v37 = vadd.f32 %v225_v33, %v221_v34 }
  0x9f   : > { %390 = vtanh.f32 %v231_v37 }
  0xa1   : > { %v229_v39 = vpop.permute.xlu1 %228  ;;  %v243_v43 = vpop.permute.xlu0 %242 }
  0xa2   : > { %v232_v40 = vadd.f32 %v229_v39, %v222_v38 }
  0xa4   : > { %392 = vtanh.f32 %v232_v40 }
  0xa5   : > { %v391_v41 = vpop.eup %390 }
  0xa6   : > { %v245_v45 = vmul.f32 %v391_v41, %v238_v42 }
  0xaa   : > { %v393_v44 = vpop.eup %392  ;;  %v257_v53 = vpop.permute.xlu1 %256 }
  0xab   : > { %v246_v46 = vmul.f32 %v393_v44, %v243_v43 }
  0xad   : > { %v247_v47 = vadd.f32 %v246_v46, %v245_v45 }
  0xaf   : > { %v248_v48 = vrot.slane %v247_v47, 4 }
  0xb1   : > { %v249_v49 = vadd.f32 %v248_v48, %v247_v47 }
  0xb3   : > { %v250_v50 = vrot.slane %v249_v49, 2 }
  0xb5   : > { %v251_v51 = vadd.f32 %v250_v50, %v249_v49 }
  0xb7   : > { %v252_v52 = vrot.slane %v251_v51, 1 }
  0xb9   : > { %v253_v54 = vadd.f32 %v252_v52, %v251_v51 }
  0xbb   : > { %v259_v55 = vadd.f32 %v257_v53, %v253_v54 }
  0xbd   : > { %260 = vst [vmem:[%s160_s25] sm:$0x1] %v259_v55 }
  0xbe   : > { %421 = shalt.err (!%p418_p3)
}
  0xbf   : > { %336 = dma.vmem_to_hbm [thread:$0]  (%p521_p5), %s273_s26, 16, %s275_s27, %s262_s28  }
  0xc0 PF: > { %p342_p4 = scmp.ge.s32.totalorder %s456_s15, 2  ;;  %s286_s8 = sand.u32 1, %s444_s12  }
  0xc1   : > { %s287_s9 = scalar_lea.sflag [#allocation3], %s286_s8 }
  0xc2   : > { %p339_p7 = pnand %p342_p4, %p525_p6 }
  0xc4   : > { %p340_p8 = pneg %p339_p7 }
  0xc6   : > { %439 = dma.done.wait (%p340_p8), %s287_s9, 16  }
  0xc7   : > { %441 = vsyncadd (%p340_p8), %s287_s9, 4294967280  ;;  %p13_p9 = scmp.ge.s32.totalorder %s508_s18, 4   ;;  %s589_s12 = smov %s448_s13 }
  0xc8   : > { %s590_s13 = smov %s452_s14  ;;  %s591_s14 = smov %s519_s21 }
  0xc9   : > { %s592_s15 = smov %s508_s18  ;;  %15 = sbr.rel (!%p13_p9) target bundleno = 3 (0x3), region = 67 }
  0xce   :  { %292 = vsyncpa [#allocation3], 1 }
  0xcf   :  { %294 = vsyncpa [#allocation3 + $0x1], 1 }

</bundles_post_ra>
